<compile_context>
chip_gen: v6e
topology: v6e:2x2x1
jax: 0.10.0
libtpu: 0.0.40
codegen_flags: <defaults>
</compile_context>

<pallas_src>
import functools

import jax
import jax.numpy as jnp
from jax.experimental import pallas as pl
from jax.experimental.pallas import tpu as pltpu

EPS = 1e-5


# ----------------------------------------------------------------------------
# Kernel: one (row-block, H*W_padded) tile of the flattened (N*C, H*W) view.
# ----------------------------------------------------------------------------
def _ibnorm_kernel(x_ref, bn_scale_ref, bn_shift_ref, o_ref, *,
                   c, bn_c, rb, hw_true, eps, homogeneous):
    x = x_ref[...].astype(jnp.float32)          # (rb, hw_pad), spatial on lanes
    hw_pad = x.shape[1]
    inv_hw = 1.0 / float(hw_true)
    padded = hw_pad != hw_true                  # static (trace-time) flag

    def in_affine():
        # Per-row (== per sample,channel) InstanceNorm stats with centered,
        # biased variance (matches PyTorch InstanceNorm2d, numerically safe).
        mu = jnp.sum(x, axis=1, keepdims=True) * inv_hw
        xc = x - mu
        if padded:
            lane = jax.lax.broadcasted_iota(jnp.int32, x.shape, 1)
            xc = jnp.where(lane < hw_true, xc, 0.0)   # padded lanes contribute 0
        var = jnp.sum(xc * xc, axis=1, keepdims=True) * inv_hw
        s = jax.lax.rsqrt(var + eps)
        return s, -mu * s

    if homogeneous:
        # Whole tile is either BN or IN -> scalar branch; BN tiles skip the
        # XLU reductions and the EUP rsqrt entirely.
        block_is_bn = ((pl.program_id(0) * rb) % c) < bn_c

        @pl.when(block_is_bn)
        def _():
            s = bn_scale_ref[...].astype(jnp.float32)
            t = bn_shift_ref[...].astype(jnp.float32)
            o_ref[...] = (x * s + t).astype(o_ref.dtype)

        @pl.when(jnp.logical_not(block_is_bn))
        def _():
            s, t = in_affine()
            o_ref[...] = (x * s + t).astype(o_ref.dtype)
    else:
        # Mixed tile: per-row mask selects folded BN affine vs IN affine.
        row = pl.program_id(0) * rb + jax.lax.broadcasted_iota(
            jnp.int32, (rb, 1), 0)
        is_bn = (row % c) < bn_c
        s_in, t_in = in_affine()
        scale = jnp.where(is_bn, bn_scale_ref[...].astype(jnp.float32), s_in)
        shift = jnp.where(is_bn, bn_shift_ref[...].astype(jnp.float32), t_in)
        o_ref[...] = (x * scale + shift).astype(o_ref.dtype)


# ----------------------------------------------------------------------------
# Row-block selection.
# ----------------------------------------------------------------------------
def _pick_row_block(rows, c, bn_c, hw_pad, itemsize, tile_budget):
    """Largest row block that divides N*C, is a multiple of 8 (or all rows),
    fits the per-step tile budget; prefers BN/IN-homogeneous tiles and keeps
    >=2 grid steps for pipelining / megacore sharding."""
    divisors = [d for d in range(1, rows + 1) if rows % d == 0]
    valid = [d for d in divisors if d % 8 == 0 or d == rows]
    fit = [d for d in valid if d * hw_pad * itemsize <= tile_budget]
    if not fit:
        # Even the smallest legal tile busts the budget; take it and let the
        # wrapper raise vmem_limit_bytes accordingly.
        # TODO(synk): add a two-pass H*W-chunked path for huge spatial sizes
        #             (matters on v7x's 64 MiB VMEM at >512x512 f32 inputs).
        chosen = min(valid)
    else:
        homog = [d for d in fit if c % d == 0 and bn_c % d == 0]
        pool = homog if (homog and 2 * max(homog) >= max(fit)) else fit
        multi = [d for d in pool if rows // d >= 2]
        chosen = max(multi) if multi else max(pool)
    return chosen, (c % chosen == 0 and bn_c % chosen == 0)


# ----------------------------------------------------------------------------
# Wrapper: IBNorm forward on an NCHW tensor.
# ----------------------------------------------------------------------------
def ibnorm(x_nchw, gamma, beta, running_mean, running_var, eps=EPS):
    n, c, h, w = x_nchw.shape
    bn_c = c // 2
    hw = h * w
    rows = n * c
    itemsize = jnp.dtype(x_nchw.dtype).itemsize

    # Lane-dense spatial axis: pad H*W up to a multiple of 128 (zeros).
    hw_pad = ((hw + 127) // 128) * 128
    x_flat = x_nchw.reshape(rows, hw)            # free reshape, NCHW contiguous
    if hw_pad != hw:
        x_flat = jnp.pad(x_flat, ((0, 0), (0, hw_pad - hw)))

    # Fold eval-mode BatchNorm into a per-row affine; IN rows are unused.
    bn_scale_half = (gamma / jnp.sqrt(running_var + eps)).astype(jnp.float32)
    bn_shift_half = (beta - running_mean * bn_scale_half).astype(jnp.float32)
    scale_c = jnp.concatenate([bn_scale_half, jnp.zeros((c - bn_c,), jnp.float32)])
    shift_c = jnp.concatenate([bn_shift_half, jnp.zeros((c - bn_c,), jnp.float32)])
    bn_scale = jnp.tile(scale_c, (n,)).reshape(rows, 1)
    bn_shift = jnp.tile(shift_c, (n,)).reshape(rows, 1)

    # Generation-aware VMEM budgeting (v7x: 64 MiB physical per TensorCore).
    try:
        vmem_cap = int(pltpu.get_tpu_info().vmem_capacity_bytes)
    except Exception:
        vmem_cap = 64 << 20
    tile_budget = min(8 << 20, vmem_cap // 16)

    rb, homogeneous = _pick_row_block(rows, c, bn_c, hw_pad, itemsize, tile_budget)
    grid = (rows // rb,)

    # Double-buffered input + output tiles, f32 working copy, headroom.
    need = 4 * rb * hw_pad * itemsize + 2 * rb * hw_pad * 4 + (2 << 20)
    vmem_limit = int(min(max(need, 32 << 20), int(vmem_cap * 0.75)))

    in_rows = n * (c - bn_c)
    cost = pl.CostEstimate(
        flops=int(2 * rows * hw + 5 * in_rows * hw),
        transcendentals=int(in_rows),
        bytes_accessed=int(2 * rows * hw_pad * itemsize + 2 * rows * 4),
    )

    kernel = functools.partial(_ibnorm_kernel, c=c, bn_c=bn_c, rb=rb,
                               hw_true=hw, eps=eps, homogeneous=homogeneous)

    y_flat = pl.pallas_call(
        kernel,
        out_shape=jax.ShapeDtypeStruct((rows, hw_pad), x_nchw.dtype),
        grid=grid,
        in_specs=[
            pl.BlockSpec((rb, hw_pad), lambda j: (j, 0)),
            pl.BlockSpec((rb, 1), lambda j: (j, 0)),
            pl.BlockSpec((rb, 1), lambda j: (j, 0)),
        ],
        out_specs=pl.BlockSpec((rb, hw_pad), lambda j: (j, 0)),
        compiler_params=pltpu.CompilerParams(
            dimension_semantics=("parallel",),
            vmem_limit_bytes=vmem_limit),
        cost_estimate=cost,
    )(x_flat, bn_scale, bn_shift)

    if hw_pad != hw:
        y_flat = y_flat[:, :hw]
    return y_flat.reshape(n, c, h, w)


# ----------------------------------------------------------------------------
# Pure-JAX reference (matches PyTorch IBNorm forward, BN in eval mode).
# ----------------------------------------------------------------------------
def ibnorm_ref(x, gamma, beta, running_mean, running_var, eps=EPS):
    c = x.shape[1]
    bn_c = c // 2
    bn_x = x[:, :bn_c]
    in_x = x[:, bn_c:]
    bn_y = ((bn_x - running_mean[None, :, None, None])
            / jnp.sqrt(running_var[None, :, None, None] + eps)
            * gamma[None, :, None, None] + beta[None, :, None, None])
    mu = jnp.mean(in_x, axis=(2, 3), keepdims=True)
    var = jnp.mean((in_x - mu) ** 2, axis=(2, 3), keepdims=True)
    in_y = (in_x - mu) / jnp.sqrt(var + eps)
    return jnp.concatenate([bn_y, in_y], axis=1)


def _run_case(key, n, c, h, w):
    kx, kg, kb, km, kv = jax.random.split(key, 5)
    x = jax.random.normal(kx, (n, c, h, w), jnp.float32) * 2.0 + 0.5
    bn_c = c // 2
    gamma = 1.0 + 0.1 * jax.random.normal(kg, (bn_c,), jnp.float32)
    beta = 0.1 * jax.random.normal(kb, (bn_c,), jnp.float32)
    running_mean = 0.1 * jax.random.normal(km, (bn_c,), jnp.float32)
    running_var = 1.0 + 0.1 * jnp.abs(jax.random.normal(kv, (bn_c,), jnp.float32))

    y = jax.jit(ibnorm)(x, gamma, beta, running_mean, running_var)
    jax.block_until_ready(y)
    y_ref = ibnorm_ref(x, gamma, beta, running_mean, running_var)

    assert y.shape == (n, c, h, w), y.shape
    assert bool(jnp.all(jnp.isfinite(y)))
    err = float(jnp.max(jnp.abs(y - y_ref)))
    assert bool(jnp.allclose(y, y_ref, rtol=1e-5, atol=2e-5)), err


if __name__ == "__main__":
    key = jax.random.PRNGKey(0)
    k1, k2 = jax.random.split(key)
    _run_case(k1, 2, 32, 16, 16)   # mixed BN/IN tiles, H*W already a x128 multiple
    _run_case(k2, 1, 16, 14, 14)   # homogeneous tiles + lane padding (196 -> 256)
    print("KERNEL_OK")
</pallas_src>

<mosaic_0001>
module attributes {stable_mosaic.version = 11 : i64} {
  func.func @_ibnorm_kernel(%arg0: i32, %arg1: memref<32x256xf32, #tpu.memory_space<vmem>>, %arg2: memref<32x1xf32, #tpu.memory_space<vmem>>, %arg3: memref<32x1xf32, #tpu.memory_space<vmem>>, %arg4: memref<32x256xf32, #tpu.memory_space<vmem>>) attributes {dimension_semantics = [#tpu.dimension_semantics<parallel>], iteration_bounds = array<i64: 2>, scalar_prefetch = 0 : i64, scratch_operands = 0 : i64, tpu.core_type = #tpu.core_type<tc>, window_params = [{transform_indices = @transform_0, window_bounds = array<i64: 32, 256>}, {transform_indices = @transform_1, window_bounds = array<i64: 32, 1>}, {transform_indices = @transform_2, window_bounds = array<i64: 32, 1>}, {transform_indices = @transform_3, window_bounds = array<i64: 32, 256>}]} {
    %c0 = arith.constant 0 : index
    %c0_0 = arith.constant 0 : index
    %0 = vector.load %arg1[%c0, %c0_0] : memref<32x256xf32, #tpu.memory_space<vmem>>, vector<32x256xf32>
    %c32_i32 = arith.constant 32 : i32
    %1 = arith.muli %arg0, %c32_i32 : i32
    %2 = tpu.iota {dimensions = array<i32: 0>} : vector<32x1xi32>
    %3 = vector.broadcast %1 : i32 to vector<32x1xi32>
    %4 = arith.addi %3, %2 : vector<32x1xi32>
    %c32_i32_1 = arith.constant 32 : i32
    %c0_i32 = arith.constant 0 : i32
    %5 = arith.cmpi eq, %c32_i32_1, %c0_i32 : i32
    %c1_i32 = arith.constant 1 : i32
    %6 = arith.select %5, %c1_i32, %c32_i32_1 : i32
    %7 = vector.broadcast %6 : i32 to vector<32x1xi32>
    %8 = arith.remsi %4, %7 : vector<32x1xi32>
    %c0_i32_2 = arith.constant 0 : i32
    %9 = vector.broadcast %c0_i32_2 : i32 to vector<32x1xi32>
    %10 = arith.cmpi ne, %8, %9 : vector<32x1xi32>
    %c0_i32_3 = arith.constant 0 : i32
    %11 = vector.broadcast %c0_i32_3 : i32 to vector<32x1xi32>
    %12 = arith.cmpi slt, %8, %11 : vector<32x1xi32>
    %c0_i32_4 = arith.constant 0 : i32
    %13 = arith.cmpi slt, %6, %c0_i32_4 : i32
    %14 = vector.broadcast %13 : i1 to vector<32x1xi1>
    %15 = vector.broadcast %14 : vector<32x1xi1> to vector<32x1xi1>
    %16 = arith.xori %12, %15 : vector<32x1xi1>
    %17 = arith.andi %16, %10 : vector<32x1xi1>
    %18 = vector.broadcast %6 : i32 to vector<32x1xi32>
    %19 = arith.addi %8, %18 : vector<32x1xi32>
    %20 = arith.select %17, %19, %8 : vector<32x1xi1>, vector<32x1xi32>
    %c16_i32 = arith.constant 16 : i32
    %21 = vector.broadcast %c16_i32 : i32 to vector<32x1xi32>
    %22 = arith.cmpi slt, %20, %21 : vector<32x1xi32>
    %cst = arith.constant dense<0.000000e+00> : vector<32xf32>
    %23 = vector.multi_reduction <add>, %0, %cst [1] : vector<32x256xf32> to vector<32xf32>
    %24 = vector.shape_cast %23 : vector<32xf32> to vector<32x1xf32>
    %cst_5 = arith.constant 3.906250e-03 : f32
    %25 = vector.broadcast %cst_5 : f32 to vector<32x1xf32>
    %26 = arith.mulf %24, %25 : vector<32x1xf32>
    %27 = vector.broadcast %26 : vector<32x1xf32> to vector<32x256xf32>
    %28 = arith.subf %0, %27 : vector<32x256xf32>
    %29 = arith.mulf %28, %28 : vector<32x256xf32>
    %cst_6 = arith.constant dense<0.000000e+00> : vector<32xf32>
    %30 = vector.multi_reduction <add>, %29, %cst_6 [1] : vector<32x256xf32> to vector<32xf32>
    %31 = vector.shape_cast %30 : vector<32xf32> to vector<32x1xf32>
    %cst_7 = arith.constant 3.906250e-03 : f32
    %32 = vector.broadcast %cst_7 : f32 to vector<32x1xf32>
    %33 = arith.mulf %31, %32 : vector<32x1xf32>
    %cst_8 = arith.constant 9.99999974E-6 : f32
    %34 = vector.broadcast %cst_8 : f32 to vector<32x1xf32>
    %35 = arith.addf %33, %34 : vector<32x1xf32>
    %36 = math.rsqrt %35 : vector<32x1xf32>
    %cst_9 = arith.constant 0.000000e+00 : f32
    %37 = vector.broadcast %cst_9 : f32 to vector<32x1xf32>
    %38 = arith.subf %37, %26 : vector<32x1xf32>
    %39 = arith.mulf %38, %36 : vector<32x1xf32>
    %c0_10 = arith.constant 0 : index
    %c0_11 = arith.constant 0 : index
    %40 = vector.load %arg2[%c0_10, %c0_11] : memref<32x1xf32, #tpu.memory_space<vmem>>, vector<32x1xf32>
    %41 = arith.select %22, %40, %36 : vector<32x1xi1>, vector<32x1xf32>
    %c0_12 = arith.constant 0 : index
    %c0_13 = arith.constant 0 : index
    %42 = vector.load %arg3[%c0_12, %c0_13] : memref<32x1xf32, #tpu.memory_space<vmem>>, vector<32x1xf32>
    %43 = arith.select %22, %42, %39 : vector<32x1xi1>, vector<32x1xf32>
    %44 = vector.broadcast %41 : vector<32x1xf32> to vector<32x256xf32>
    %45 = arith.mulf %0, %44 : vector<32x256xf32>
    %46 = vector.broadcast %43 : vector<32x1xf32> to vector<32x256xf32>
    %47 = arith.addf %45, %46 : vector<32x256xf32>
    %c0_14 = arith.constant 0 : index
    %c0_15 = arith.constant 0 : index
    %48 = vector.load %arg4[%c0_14, %c0_15] : memref<32x256xf32, #tpu.memory_space<vmem>>, vector<32x256xf32>
    tpu.vector_store %arg4[%c0_14, %c0_15], %47 {strides = array<i32>} : memref<32x256xf32, #tpu.memory_space<vmem>>, vector<32x256xf32>,
    return
  }
  func.func @transform_0(%arg0: i32) -> (i32, i32) {
    %c0_i32 = arith.constant 0 : i32
    %c0_i32_0 = arith.constant 0 : i32
    return %arg0, %c0_i32 : i32, i32
  }
  func.func @transform_1(%arg0: i32) -> (i32, i32) {
    %c0_i32 = arith.constant 0 : i32
    %c0_i32_0 = arith.constant 0 : i32
    return %arg0, %c0_i32 : i32, i32
  }
  func.func @transform_2(%arg0: i32) -> (i32, i32) {
    %c0_i32 = arith.constant 0 : i32
    %c0_i32_0 = arith.constant 0 : i32
    return %arg0, %c0_i32 : i32, i32
  }
  func.func @transform_3(%arg0: i32) -> (i32, i32) {
    %c0_i32 = arith.constant 0 : i32
    %c0_i32_0 = arith.constant 0 : i32
    return %arg0, %c0_i32 : i32, i32
  }
}

</mosaic_0001>

<bundles_post_ra>
// kernel: tile.13
= control target key start
LH: loop header
LB: loop body
LE: loop exit
PB: predicated region body
PF: predicated region fallthrough
CT: control target
= control target key end

     0   :  { %s22_s0 = inlined_call_operand.vmem [shape: f32[32], index: 0, kind: input, shape index: {}]   ;;  %s23_s1 = inlined_call_operand.vmem [shape: f32[2,32], index: 1, kind: output, shape index: {}]  }
   0x1   :  { %v4_v0 = vld [vmem:[%s22_s0] ss:$0 sm:$0xff] }
   0x2   :  { %5 = vst [vmem:[%s23_s1] sm:$0x3] %v4_v0 }

// kernel: tile.1
= control target key start
LH: loop header
LB: loop body
LE: loop exit
PB: predicated region body
PF: predicated region fallthrough
CT: control target
= control target key end

     0   :  { %s355_s8 = smov 125   ;;  %s356_s9 = smov 126   ;;  %vm8_vm0 = vcmask 7168   ;;  %s654_s0 = inlined_call_operand.vmem [shape: f32[2,32], index: 0, kind: input, shape index: {}]   ;;  %s655_s1 = inlined_call_operand.vmem [shape: f32[64,1], index: 1, kind: output, shape index: {}]  }
   0x1   :  { %v5_v0 = vld [vmem:[%s654_s0] sm:$0x3]  ;;  %s354_s0 = smov 127   ;;  %s357_s10 = smov 124  }
   0x2   :  { %6 = vst [vmem:[#allocation0] sm:$0x3] %v5_v0  ;;  %s358_s11 = smov 123   ;;  %s359_s12 = smov 122  }
   0x3   :  { %s360_s13 = smov 121   ;;  %s361_s14 = smov 120  }
   0x4   :  { %s362_s15 = smov 119   ;;  %s363_s16 = smov 118  }
   0x5   :  { %s364_s17 = smov 117   ;;  %s365_s18 = smov 116  }
   0x6   :  { %s366_s19 = smov 115   ;;  %s367_s20 = smov 114  }
   0x7   :  { %s368_s21 = smov 113   ;;  %s369_s22 = smov 112  }
   0x8   :  { %s370_s23 = smov 111   ;;  %s371_s24 = smov 110  }
   0x9   :  { %v12_v1 = vld [vmem:[#allocation0] sm:$0x3]   ;;  %s372_s25 = smov 109   ;;  %s373_s26 = smov 108  }
   0xa   :  { %v28_v2 = vld [vmem:[#allocation0] sm:$0x3]   ;;  %13 = vrot.lane.b32.xlu0 %v12_v1, %s354_s0  ;;  %s374_s27 = smov 107   ;;  %s375_s28 = smov 106  }
   0xb   :  { %29 = vrot.lane.b32.xlu1 %v28_v2, %s355_s8  ;;  %v20_v3 = vld [vmem:[#allocation0] sm:$0x3]   ;;  %s376_s29 = smov 105   ;;  %s377_s30 = smov 104  }
   0xc   :  { %v36_v4 = vld [vmem:[#allocation0] sm:$0x3]   ;;  %s378_s6 = smov 103   ;;  %s379_s7 = smov 102  }
   0xd   :  { %v44_v5 = vld [vmem:[#allocation0] sm:$0x3]   ;;  %s380_s0 = smov 101   ;;  %s381_s8 = smov 100  }
   0xe   :  { %21 = vrot.lane.b32.xlu0 %v20_v3, %s356_s9  ;;  %v52_v6 = vld [vmem:[#allocation0] sm:$0x3]   ;;  %s382_s9 = smov 99  }
   0xf   :  { %37 = vrot.lane.b32.xlu1 %v36_v4, %s357_s10  ;;  %v60_v7 = vld [vmem:[#allocation0] sm:$0x3]   ;;  %s383_s10 = smov 98  }
  0x10   :  { %v68_v8 = vld [vmem:[#allocation0] sm:$0x3]  }
  0x11   :  { %v76_v9 = vld [vmem:[#allocation0] sm:$0x3]  }
  0x12   :  { %45 = vrot.lane.b32.xlu0 %v44_v5, %s358_s11  ;;  %v84_v10 = vld [vmem:[#allocation0] sm:$0x3]   ;;  %s384_s11 = smov 97  }
  0x13   :  { %53 = vrot.lane.b32.xlu1 %v52_v6, %s359_s12  ;;  %v92_v11 = vld [vmem:[#allocation0] sm:$0x3]  }
  0x14   :  { %v100_v12 = vld [vmem:[#allocation0] sm:$0x3]  }
  0x15   :  { %v108_v13 = vld [vmem:[#allocation0] sm:$0x3]  }
  0x16   :  { %61 = vrot.lane.b32.xlu0 %v60_v7, %s360_s13  ;;  %v116_v14 = vld [vmem:[#allocation0] sm:$0x3]  }
  0x17   :  { %69 = vrot.lane.b32.xlu1 %v68_v8, %s361_s14  ;;  %v124_v15 = vld [vmem:[#allocation0] sm:$0x3]  }
  0x18   :  { %v132_v16 = vld [vmem:[#allocation0] sm:$0x3]  }
  0x19   :  { %v140_v17 = vld [vmem:[#allocation0] sm:$0x3]  }
  0x1a   :  { %77 = vrot.lane.b32.xlu0 %v76_v9, %s362_s15  ;;  %v148_v18 = vld [vmem:[#allocation0] sm:$0x3]  }
  0x1b   :  { %85 = vrot.lane.b32.xlu1 %v84_v10, %s363_s16  ;;  %v156_v19 = vld [vmem:[#allocation0] sm:$0x3]  }
  0x1c   :  { %v164_v20 = vld [vmem:[#allocation0] sm:$0x3]  }
  0x1d   :  { %v172_v21 = vld [vmem:[#allocation0] sm:$0x3]  }
  0x1e   :  { %93 = vrot.lane.b32.xlu0 %v92_v11, %s364_s17  ;;  %v180_v22 = vld [vmem:[#allocation0] sm:$0x3]  }
  0x1f   :  { %101 = vrot.lane.b32.xlu1 %v100_v12, %s365_s18  ;;  %v188_v23 = vld [vmem:[#allocation0] sm:$0x3]  }
  0x20   :  { %v196_v24 = vld [vmem:[#allocation0] sm:$0x3]  }
  0x21   :  { %v204_v25 = vld [vmem:[#allocation0] sm:$0x3]  }
  0x22   :  { %109 = vrot.lane.b32.xlu0 %v108_v13, %s366_s19  ;;  %v212_v26 = vld [vmem:[#allocation0] sm:$0x3]  }
  0x23   :  { %117 = vrot.lane.b32.xlu1 %v116_v14, %s367_s20  ;;  %v7_v27 = vld [vmem:[#allocation0] sm:$0x3]  }
  0x24   :  { %9 = vst.msk [vmem:[%s655_s1] sm:$0x1] %vm8_vm0, %v7_v27   ;;  %260 = vst.msk [vmem:[%s655_s1 + $0x1f] sm:$0x2] %vm8_vm0, %v7_v27   ;;  %v220_v28 = vld [vmem:[#allocation0] sm:$0x3]  }
  0x25   :  { %v228_v29 = vld [vmem:[#allocation0] sm:$0x3]  }
  0x26   :  { %125 = vrot.lane.b32.xlu0 %v124_v15, %s368_s21  ;;  %v236_v30 = vld [vmem:[#allocation0] sm:$0x3]  }
  0x27   :  { %133 = vrot.lane.b32.xlu1 %v132_v16, %s369_s22  ;;  %v244_v31 = vld [vmem:[#allocation0] sm:$0x3]  }
  0x28   :  { %v252_v32 = vld [vmem:[#allocation0] sm:$0x3]  }
  0x2a   :  { %141 = vrot.lane.b32.xlu0 %v140_v17, %s370_s23 }
  0x2b   :  { %149 = vrot.lane.b32.xlu1 %v148_v18, %s371_s24 }
  0x2e   :  { %157 = vrot.lane.b32.xlu0 %v156_v19, %s372_s25 }
  0x2f   :  { %165 = vrot.lane.b32.xlu1 %v164_v20, %s373_s26 }
  0x32   :  { %173 = vrot.lane.b32.xlu0 %v172_v21, %s374_s27 }
  0x33   :  { %181 = vrot.lane.b32.xlu1 %v180_v22, %s375_s28 }
  0x36   :  { %189 = vrot.lane.b32.xlu0 %v188_v23, %s376_s29 }
  0x37   :  { %197 = vrot.lane.b32.xlu1 %v196_v24, %s377_s30 }
  0x3a   :  { %205 = vrot.lane.b32.xlu0 %v204_v25, %s378_s6 }
  0x3b   :  { %213 = vrot.lane.b32.xlu1 %v212_v26, %s379_s7 }
  0x3e   :  { %221 = vrot.lane.b32.xlu0 %v220_v28, %s380_s0 }
  0x3f   :  { %229 = vrot.lane.b32.xlu1 %v228_v29, %s381_s8 }
  0x42   :  { %237 = vrot.lane.b32.xlu0 %v236_v30, %s382_s9 }
  0x43   :  { %245 = vrot.lane.b32.xlu1 %v244_v31, %s383_s10 }
  0x46   :  { %253 = vrot.lane.b32.xlu0 %v252_v32, %s384_s11 }
  0x7c   :  { %v14_v33 = vpop.permute.xlu0 %13  }
  0x7d   :  { %v30_v34 = vpop.permute.xlu1 %29   ;;  %261 = vst.msk [vmem:[%s655_s1 + $0x1] sm:$0x1] %vm8_vm0, %v14_v33   ;;  %262 = vst.msk [vmem:[%s655_s1 + $0x20] sm:$0x2] %vm8_vm0, %v14_v33  }
  0x7e   :  { %265 = vst.msk [vmem:[%s655_s1 + $0x3] sm:$0x1] %vm8_vm0, %v30_v34   ;;  %266 = vst.msk [vmem:[%s655_s1 + $0x22] sm:$0x2] %vm8_vm0, %v30_v34  }
  0x80   :  { %v22_v35 = vpop.permute.xlu0 %21  }
  0x81   :  { %v38_v36 = vpop.permute.xlu1 %37   ;;  %263 = vst.msk [vmem:[%s655_s1 + $0x2] sm:$0x1] %vm8_vm0, %v22_v35   ;;  %264 = vst.msk [vmem:[%s655_s1 + $0x21] sm:$0x2] %vm8_vm0, %v22_v35  }
  0x82   :  { %267 = vst.msk [vmem:[%s655_s1 + $0x4] sm:$0x1] %vm8_vm0, %v38_v36   ;;  %268 = vst.msk [vmem:[%s655_s1 + $0x23] sm:$0x2] %vm8_vm0, %v38_v36  }
  0x84   :  { %v46_v37 = vpop.permute.xlu0 %45  }
  0x85   :  { %v54_v38 = vpop.permute.xlu1 %53   ;;  %269 = vst.msk [vmem:[%s655_s1 + $0x5] sm:$0x1] %vm8_vm0, %v46_v37   ;;  %270 = vst.msk [vmem:[%s655_s1 + $0x24] sm:$0x2] %vm8_vm0, %v46_v37  }
  0x86   :  { %271 = vst.msk [vmem:[%s655_s1 + $0x6] sm:$0x1] %vm8_vm0, %v54_v38   ;;  %272 = vst.msk [vmem:[%s655_s1 + $0x25] sm:$0x2] %vm8_vm0, %v54_v38  }
  0x88   :  { %v62_v39 = vpop.permute.xlu0 %61  }
  0x89   :  { %v70_v40 = vpop.permute.xlu1 %69   ;;  %273 = vst.msk [vmem:[%s655_s1 + $0x7] sm:$0x1] %vm8_vm0, %v62_v39   ;;  %274 = vst.msk [vmem:[%s655_s1 + $0x26] sm:$0x2] %vm8_vm0, %v62_v39  }
  0x8a   :  { %275 = vst.msk [vmem:[%s655_s1 + $0x8] sm:$0x1] %vm8_vm0, %v70_v40   ;;  %276 = vst.msk [vmem:[%s655_s1 + $0x27] sm:$0x2] %vm8_vm0, %v70_v40  }
  0x8c   :  { %v78_v41 = vpop.permute.xlu0 %77  }
  0x8d   :  { %v86_v42 = vpop.permute.xlu1 %85   ;;  %277 = vst.msk [vmem:[%s655_s1 + $0x9] sm:$0x1] %vm8_vm0, %v78_v41   ;;  %278 = vst.msk [vmem:[%s655_s1 + $0x28] sm:$0x2] %vm8_vm0, %v78_v41  }
  0x8e   :  { %279 = vst.msk [vmem:[%s655_s1 + $0xa] sm:$0x1] %vm8_vm0, %v86_v42   ;;  %280 = vst.msk [vmem:[%s655_s1 + $0x29] sm:$0x2] %vm8_vm0, %v86_v42  }
  0x90   :  { %v94_v43 = vpop.permute.xlu0 %93  }
  0x91   :  { %v102_v44 = vpop.permute.xlu1 %101   ;;  %281 = vst.msk [vmem:[%s655_s1 + $0xb] sm:$0x1] %vm8_vm0, %v94_v43   ;;  %282 = vst.msk [vmem:[%s655_s1 + $0x2a] sm:$0x2] %vm8_vm0, %v94_v43  }
  0x92   :  { %283 = vst.msk [vmem:[%s655_s1 + $0xc] sm:$0x1] %vm8_vm0, %v102_v44   ;;  %284 = vst.msk [vmem:[%s655_s1 + $0x2b] sm:$0x2] %vm8_vm0, %v102_v44  }
  0x94   :  { %v110_v45 = vpop.permute.xlu0 %109  }
  0x95   :  { %v118_v46 = vpop.permute.xlu1 %117   ;;  %285 = vst.msk [vmem:[%s655_s1 + $0xd] sm:$0x1] %vm8_vm0, %v110_v45   ;;  %286 = vst.msk [vmem:[%s655_s1 + $0x2c] sm:$0x2] %vm8_vm0, %v110_v45  }
  0x96   :  { %287 = vst.msk [vmem:[%s655_s1 + $0xe] sm:$0x1] %vm8_vm0, %v118_v46   ;;  %288 = vst.msk [vmem:[%s655_s1 + $0x2d] sm:$0x2] %vm8_vm0, %v118_v46  }
  0x98   :  { %v126_v47 = vpop.permute.xlu0 %125  }
  0x99   :  { %v134_v48 = vpop.permute.xlu1 %133   ;;  %289 = vst.msk [vmem:[%s655_s1 + $0xf] sm:$0x1] %vm8_vm0, %v126_v47   ;;  %290 = vst.msk [vmem:[%s655_s1 + $0x2e] sm:$0x2] %vm8_vm0, %v126_v47  }
  0x9a   :  { %291 = vst.msk [vmem:[%s655_s1 + $0x10] sm:$0x1] %vm8_vm0, %v134_v48   ;;  %292 = vst.msk [vmem:[%s655_s1 + $0x2f] sm:$0x2] %vm8_vm0, %v134_v48  }
  0x9c   :  { %v142_v49 = vpop.permute.xlu0 %141  }
  0x9d   :  { %v150_v50 = vpop.permute.xlu1 %149   ;;  %293 = vst.msk [vmem:[%s655_s1 + $0x11] sm:$0x1] %vm8_vm0, %v142_v49   ;;  %294 = vst.msk [vmem:[%s655_s1 + $0x30] sm:$0x2] %vm8_vm0, %v142_v49  }
  0x9e   :  { %295 = vst.msk [vmem:[%s655_s1 + $0x12] sm:$0x1] %vm8_vm0, %v150_v50   ;;  %296 = vst.msk [vmem:[%s655_s1 + $0x31] sm:$0x2] %vm8_vm0, %v150_v50  }
  0xa0   :  { %v158_v51 = vpop.permute.xlu0 %157  }
  0xa1   :  { %v166_v52 = vpop.permute.xlu1 %165   ;;  %297 = vst.msk [vmem:[%s655_s1 + $0x13] sm:$0x1] %vm8_vm0, %v158_v51   ;;  %298 = vst.msk [vmem:[%s655_s1 + $0x32] sm:$0x2] %vm8_vm0, %v158_v51  }
  0xa2   :  { %299 = vst.msk [vmem:[%s655_s1 + $0x14] sm:$0x1] %vm8_vm0, %v166_v52   ;;  %300 = vst.msk [vmem:[%s655_s1 + $0x33] sm:$0x2] %vm8_vm0, %v166_v52  }
  0xa4   :  { %v174_v53 = vpop.permute.xlu0 %173  }
  0xa5   :  { %v182_v54 = vpop.permute.xlu1 %181   ;;  %301 = vst.msk [vmem:[%s655_s1 + $0x15] sm:$0x1] %vm8_vm0, %v174_v53   ;;  %302 = vst.msk [vmem:[%s655_s1 + $0x34] sm:$0x2] %vm8_vm0, %v174_v53  }
  0xa6   :  { %303 = vst.msk [vmem:[%s655_s1 + $0x16] sm:$0x1] %vm8_vm0, %v182_v54   ;;  %304 = vst.msk [vmem:[%s655_s1 + $0x35] sm:$0x2] %vm8_vm0, %v182_v54  }
  0xa8   :  { %v190_v55 = vpop.permute.xlu0 %189  }
  0xa9   :  { %v198_v56 = vpop.permute.xlu1 %197   ;;  %305 = vst.msk [vmem:[%s655_s1 + $0x17] sm:$0x1] %vm8_vm0, %v190_v55   ;;  %306 = vst.msk [vmem:[%s655_s1 + $0x36] sm:$0x2] %vm8_vm0, %v190_v55  }
  0xaa   :  { %307 = vst.msk [vmem:[%s655_s1 + $0x18] sm:$0x1] %vm8_vm0, %v198_v56   ;;  %308 = vst.msk [vmem:[%s655_s1 + $0x37] sm:$0x2] %vm8_vm0, %v198_v56  }
  0xac   :  { %v206_v57 = vpop.permute.xlu0 %205  }
  0xad   :  { %v214_v58 = vpop.permute.xlu1 %213   ;;  %309 = vst.msk [vmem:[%s655_s1 + $0x19] sm:$0x1] %vm8_vm0, %v206_v57   ;;  %310 = vst.msk [vmem:[%s655_s1 + $0x38] sm:$0x2] %vm8_vm0, %v206_v57  }
  0xae   :  { %311 = vst.msk [vmem:[%s655_s1 + $0x1a] sm:$0x1] %vm8_vm0, %v214_v58   ;;  %312 = vst.msk [vmem:[%s655_s1 + $0x39] sm:$0x2] %vm8_vm0, %v214_v58  }
  0xb0   :  { %v222_v59 = vpop.permute.xlu0 %221  }
  0xb1   :  { %v230_v60 = vpop.permute.xlu1 %229   ;;  %313 = vst.msk [vmem:[%s655_s1 + $0x1b] sm:$0x1] %vm8_vm0, %v222_v59   ;;  %314 = vst.msk [vmem:[%s655_s1 + $0x3a] sm:$0x2] %vm8_vm0, %v222_v59  }
  0xb2   :  { %315 = vst.msk [vmem:[%s655_s1 + $0x1c] sm:$0x1] %vm8_vm0, %v230_v60   ;;  %316 = vst.msk [vmem:[%s655_s1 + $0x3b] sm:$0x2] %vm8_vm0, %v230_v60  }
  0xb4   :  { %v238_v61 = vpop.permute.xlu0 %237  }
  0xb5   :  { %v246_v62 = vpop.permute.xlu1 %245   ;;  %317 = vst.msk [vmem:[%s655_s1 + $0x1d] sm:$0x1] %vm8_vm0, %v238_v61   ;;  %318 = vst.msk [vmem:[%s655_s1 + $0x3c] sm:$0x2] %vm8_vm0, %v238_v61  }
  0xb6   :  { %319 = vst.msk [vmem:[%s655_s1 + $0x1e] sm:$0x1] %vm8_vm0, %v246_v62   ;;  %320 = vst.msk [vmem:[%s655_s1 + $0x3d] sm:$0x2] %vm8_vm0, %v246_v62  }
  0xb8   :  { %v254_v63 = vpop.permute.xlu0 %253  }
  0xb9   :  { %321 = vst.msk [vmem:[%s655_s1 + $0x1f] sm:$0x1] %vm8_vm0, %v254_v63   ;;  %322 = vst.msk [vmem:[%s655_s1 + $0x3e] sm:$0x2] %vm8_vm0, %v254_v63  }

// kernel: ibnorm.1
= control target key start
LH: loop header
LB: loop body
LE: loop exit
PB: predicated region body
PF: predicated region fallthrough
CT: control target
= control target key end

     0   :  { %s592_s12 = smov 0   ;;  %s729_s0 = inlined_call_operand.vmem [shape: f32[64,256], index: 0, kind: input, shape index: {}]   ;;  %s730_s1 = inlined_call_operand.vmem [shape: f32[64,1], index: 1, kind: input, shape index: {}]   ;;  %s731_s2 = inlined_call_operand.vmem [shape: f32[64,1], index: 2, kind: input, shape index: {}]   ;;  %s732_s3 = inlined_call_operand.vmem [shape: f32[64,256], index: 3, kind: output, shape index: {}]  }
   0x1 LB: > { %s520_s13 = sadd.s32 4294967295, %s569_s12   ;;  %p524_p0 = scmp.ge.s32.totalorder %s569_s12, 1  ;;  %s569_s12 = sphi %s592_s12, %s13_s12  }
   0x2   : > { %p161_p1 = scmp.lt.s32.totalorder %s569_s12, 3 }
   0x4   : > { %p162_p2 = pnand %p524_p0, %p161_p1 }
   0x5   : > { %s525_s14 = sshll.u32 (!%p162_p2), %s520_s13, 2  ;;  %s535_s19 = sshll.u32 (!%p162_p2), %s520_s13, 5 }
   0x6   : > { %165 = sbr.rel (%p162_p2) target bundleno = 475 (0x1db), region = 32  ;;  %p198_p3 = scmp.lt.s32.totalorder (!%p162_p2), %s525_s14, 7 }
   0xb   : > { %s742_s14 = smov (!%p198_p3, %s525_s14), 7  ;;  %v571_v40 = vmov 0   ;;  %v232_v41 = vlaneseq  ;;  %v237_v43 = vstv %s535_s19 }
   0xc   : > { %s542_s15 = sshll.u32 %s742_s14, 4  ;;  %553 = vset.pattern.permute.xlu0 %v571_v40  ;;  %554 = vset.pattern.permute.xlu1 %v571_v40  ;;  %s529_s20 = sshll.u32 %s742_s14, 3 }
   0xd   : > { %s202_s18 = scalar_lea.vmem %s729_s0, %s542_s15  ;;  %v233_v42 = vshrl.u32 %v232_v41, 7  ;;  %s666_s23 = scalar_lea.vmem %s730_s1, %s529_s20 }
   0xe   : > { %v610_v0 = vld [vmem:[%s202_s18] sm:$0xff]  ;;  %v612_v1 = vld [vmem:[%s202_s18 + $0x8] sm:$0xff]  ;;  %v620_v5 = vld [vmem:[%s202_s18 + $0x10] sm:$0xff]  ;;  %s214_s26 = scalar_lea.vmem %s731_s2, %s529_s20  ;;  %s221_s29 = scalar_lea.vmem %s732_s3, %s542_s15 }
   0xf   : > { %v614_v2 = vld [vmem:[%s202_s18 + $0x20] sm:$0xff]  ;;  %v294_v3 = vadd.f32 %v612_v1, %v610_v0  ;;  %v618_v4 = vld [vmem:[%s202_s18 + $0x28] sm:$0xff]  ;;  %v622_v6 = vld [vmem:[%s202_s18 + $0x18] sm:$0xff]  ;;  %v238_v44 = vadd.s32 %v237_v43, %v233_v42  ;;  %v234_v45 = vadd.s32 8, %v233_v42  ;;  %v235_v48 = vadd.s32 16, %v233_v42 }
  0x10   : > { %v300_v7 = vadd.f32 %v618_v4, %v614_v2  ;;  %v626_v8 = vld [vmem:[%s202_s18 + $0x30] sm:$0xff]  ;;  %v628_v9 = vld [vmem:[%s202_s18 + $0x38] sm:$0xff]  ;;  %v297_v10 = vadd.f32 %v622_v6, %v620_v5  ;;  %v236_v52 = vadd.s32 24, %v233_v42  ;;  %v359_v41 = vld [vmem:[%s666_s23 + $0x8] sm:$0xff] }
  0x11   : > { %295 = vadd.xlane.f32.xlu0 %v294_v3  ;;  %v303_v11 = vadd.f32 %v628_v9, %v626_v8  ;;  %v243_v46 = vsub.s32 0, %v238_v44  ;;  %v239_v47 = vadd.s32 %v237_v43, %v234_v45  ;;  %v240_v51 = vadd.s32 %v237_v43, %v235_v48  ;;  %v360_v45 = vld [vmem:[%s666_s23 + $0x10] sm:$0xff] }
  0x12   : > { %301 = vadd.xlane.f32.xlu1 %v300_v7  ;;  %v241_v56 = vadd.s32 %v237_v43, %v236_v52  ;;  %vm242_vm0 = vcmp.lt.s32.totalorder %v238_v44, 0 }
  0x13   : > { %v536_v49 = vmin.u32 %v243_v46, %v238_v44  ;;  %v250_v50 = vsub.s32 0, %v239_v47  ;;  %v257_v55 = vsub.s32 0, %v240_v51  ;;  %vm249_vm1 = vcmp.lt.s32.totalorder %v239_v47, 0 }
  0x14   : > { %v264_v61 = vsub.s32 0, %v241_v56  ;;  %vm256_vm4 = vcmp.lt.s32.totalorder %v240_v51, 0  ;;  %vm263_vm8 = vcmp.lt.s32.totalorder %v241_v56, 0 }
  0x15   : > { %298 = vadd.xlane.f32.xlu0 %v297_v10  ;;  %v246_v53 = vand.u32 31, %v536_v49  ;;  %v537_v54 = vmin.u32 %v250_v50, %v239_v47  ;;  %v538_v60 = vmin.u32 %v257_v55, %v240_v51  ;;  %v361_v51 = vld [vmem:[%s666_s23 + $0x18] sm:$0xff] }
  0x16   : > { %304 = vadd.xlane.f32.xlu1 %v303_v11 }
  0x17   : > { %v247_v58 = vsub.s32 0, %v246_v53  ;;  %v253_v59 = vand.u32 31, %v537_v54 }
  0x19   : > { %v248_v10 = vsel %vm242_vm0, %v247_v58, %v246_v53  ;;  %v254_v11 = vsub.s32 0, %v253_v59 }
  0x1a   : > { %vm270_vm2 = vcmp.ne.s32.totalorder %v248_v10, 0  ;;  %vm274_vm3 = vcmp.lt.s32.totalorder %v248_v10, 0 }
  0x1b   : > { %vm278_vm5 = vmand %vm274_vm3, %vm270_vm2 }
  0x9a   : > { %v296_v12 = vpop.xlane.xlu0 %295 }
  0x9b   : > { %v634_v13 = vmul.f32 0.00390625, %v296_v12  ;;  %v302_v14 = vpop.xlane.xlu1 %301  ;;  %v260_v12 = vand.u32 31, %v538_v60 }
  0x9c   : > { %v636_v15 = vmul.f32 0.00390625, %v302_v14  ;;  %v539_v14 = vmin.u32 %v264_v61, %v241_v56  ;;  %v367_v61 = vld [vmem:[%s214_s26 + $0x8] sm:$0xff] }
  0x9d   : > { %v310_v16 = vsub.f32 %v610_v0, %v634_v13  ;;  %v311_v17 = vsub.f32 %v612_v1, %v634_v13  ;;  %v350_v54 = vsub.f32 0.0, %v634_v13 }
  0x9e   : > { %v299_v18 = vpop.xlane.xlu0 %298  ;;  %v314_v19 = vsub.f32 %v614_v2, %v636_v15  ;;  %v315_v20 = vsub.f32 %v618_v4, %v636_v15  ;;  %v352_v13 = vsub.f32 0.0, %v636_v15 }
  0x9f   : > { %v646_v21 = vmul.f32 0.00390625, %v299_v18  ;;  %v305_v22 = vpop.xlane.xlu1 %304  ;;  %v318_v23 = vmul.f32 %v310_v16, %v310_v16  ;;  %v319_v24 = vmul.f32 %v311_v17, %v311_v17 }
  0xa0   : > { %v648_v25 = vmul.f32 0.00390625, %v305_v22  ;;  %v322_v26 = vmul.f32 %v314_v19, %v314_v19  ;;  %v323_v27 = vmul.f32 %v315_v20, %v315_v20  ;;  %v255_v22 = vsel %vm249_vm1, %v254_v11, %v253_v59  ;;  %v369_v11 = vld [vmem:[%s214_s26 + $0x18] sm:$0xff] }
  0xa1   : > { %v326_v28 = vadd.f32 %v319_v24, %v318_v23  ;;  %v312_v29 = vsub.f32 %v620_v5, %v646_v21  ;;  %v313_v30 = vsub.f32 %v622_v6, %v646_v21  ;;  %v261_v23 = vsub.s32 0, %v260_v12 }
  0xa2   : > { %v316_v31 = vsub.f32 %v626_v8, %v648_v25  ;;  %v317_v32 = vsub.f32 %v628_v9, %v648_v25  ;;  %v332_v33 = vadd.f32 %v323_v27, %v322_v26  ;;  %v267_v24 = vand.u32 31, %v539_v14 }
  0xa3   : > { %327 = vadd.xlane.f32.xlu0 %v326_v28  ;;  %v320_v34 = vmul.f32 %v312_v29, %v312_v29  ;;  %v321_v35 = vmul.f32 %v313_v30, %v313_v30  ;;  %v282_v27 = vadd.s32 32, %v248_v10  ;;  %vm271_vm6 = vcmp.ne.s32.totalorder %v255_v22, 0 }
  0xa4   : > { %v324_v36 = vmul.f32 %v316_v31, %v316_v31  ;;  %v325_v37 = vmul.f32 %v317_v32, %v317_v32  ;;  %vm275_vm7 = vcmp.lt.s32.totalorder %v255_v22, 0  ;;  %v262_v29 = vsel %vm256_vm4, %v261_v23, %v260_v12 }
  0xa5   : > { %v329_v38 = vadd.f32 %v321_v35, %v320_v34  ;;  %v268_v30 = vsub.s32 0, %v267_v24  ;;  %v286_v31 = vsel %vm278_vm5, %v282_v27, %v248_v10  ;;  %v283_v32 = vadd.s32 32, %v255_v22  ;;  %vm279_vm9 = vmand %vm275_vm7, %vm271_vm6  ;;  %v358_v34 = vld [vmem:[%s666_s23] sm:$0xff] }
  0xa6   : > { %v335_v39 = vadd.f32 %v325_v37, %v324_v36  ;;  %vm272_vm10 = vcmp.ne.s32.totalorder %v262_v29, 0  ;;  %vm276_vm11 = vcmp.lt.s32.totalorder %v262_v29, 0  ;;  %vm668_vm12 = vcmp.lt.s32.totalorder %v286_v31, 16 }
  0xa7   : > { %333 = vadd.xlane.f32.xlu0 %v332_v33  ;;  %330 = vadd.xlane.f32.xlu1 %v329_v38  ;;  %v269_v35 = vsel %vm263_vm8, %v268_v30, %v267_v24  ;;  %v287_v36 = vsel %vm279_vm9, %v283_v32, %v255_v22  ;;  %v284_v37 = vadd.s32 32, %v262_v29  ;;  %vm280_vm13 = vmand %vm276_vm11, %vm272_vm10  ;;  %v351_v58 = vsub.f32 0.0, %v646_v21 }
  0xa8   : > { %vm273_vm14 = vcmp.ne.s32.totalorder %v269_v35, 0  ;;  %vm277_vm15 = vcmp.lt.s32.totalorder %v269_v35, 0  ;;  %vm675_vm0 = vcmp.lt.s32.totalorder %v287_v36, 16  ;;  %v285_v43 = vadd.s32 32, %v269_v35 }
  0xa9   : > { %v288_v42 = vsel %vm280_vm13, %v284_v37, %v262_v29  ;;  %vm281_vm1 = vmand %vm277_vm15, %vm273_vm14 }
  0xaa   : > { %vm683_vm2 = vcmp.lt.s32.totalorder %v288_v42, 16  ;;  %v289_v50 = vsel %vm281_vm1, %v285_v43, %v269_v35 }
  0xab   : > { %336 = vadd.xlane.f32.xlu1 %v335_v39  ;;  %vm690_vm3 = vcmp.lt.s32.totalorder %v289_v50, 16 }
 0x12c   : > { %v328_v57 = vpop.xlane.xlu0 %327 }
 0x12d   : > { %v338_v62 = vmul.f32 0.00390625, %v328_v57  ;;  %v366_v57 = vld [vmem:[%s214_s26] sm:$0xff] }
 0x12f   : > { %v342_v63 = vadd.f32 1e-05, %v338_v62 }
 0x130   : > { %v331_v3 = vpop.xlane.xlu1 %330  ;;  %v334_v7 = vpop.xlane.xlu0 %333 }
 0x131   : > { %555 = vrsqrt.f32 %v342_v63  ;;  %v339_v16 = vmul.f32 0.00390625, %v331_v3  ;;  %v340_v17 = vmul.f32 0.00390625, %v334_v7  ;;  %v368_v3 = vld [vmem:[%s214_s26 + $0x10] sm:$0xff]  ;;  %v353_v7 = vsub.f32 0.0, %v648_v25 }
 0x133   : > { %v343_v18 = vadd.f32 1e-05, %v339_v16  ;;  %v344_v19 = vadd.f32 1e-05, %v340_v17 }
 0x134   : > { %v337_v20 = vpop.xlane.xlu1 %336 }
 0x135   : > { %557 = vrsqrt.f32 %v343_v18  ;;  %v341_v26 = vmul.f32 0.00390625, %v337_v20 }
 0x136   : > { %559 = vrsqrt.f32 %v344_v19 }
 0x137   : > { %v345_v28 = vadd.f32 1e-05, %v341_v26 }
 0x139   : > { %561 = vrsqrt.f32 %v345_v28 }
 0x13e   : > { %v556_v38 = vpop.eup %555 }
 0x13f   : > { %v362_v39 = vsel %vm668_vm12, %v358_v34, %v556_v38  ;;  %v354_v56 = vmul.f32 %v556_v38, %v350_v54 }
 0x140   : > { %376 = vperm.xlu0 %553, %v362_v39  }
 0x141   : > { %v370_v59 = vsel %vm668_vm12, %v366_v57, %v354_v56 }
 0x142   : > { %v558_v44 = vpop.eup %557 }
 0x143   : > { %v363_v46 = vsel %vm675_vm0, %v359_v41, %v558_v44  ;;  %v560_v47 = vpop.eup %559  ;;  %v355_v60 = vmul.f32 %v558_v44, %v351_v58 }
 0x144   : > { %381 = vperm.xlu1 %554, %v363_v46   ;;  %v364_v49 = vsel %vm683_vm2, %v360_v45, %v560_v47  ;;  %v356_v63 = vmul.f32 %v560_v47, %v352_v13 }
 0x145   : > { %v371_v62 = vsel %vm675_vm0, %v367_v61, %v355_v60 }
 0x146   : > { %v562_v52 = vpop.eup %561  ;;  %v372_v21 = vsel %vm683_vm2, %v368_v3, %v356_v63 }
 0x147   : > { %v365_v55 = vsel %vm690_vm3, %v361_v51, %v562_v52  ;;  %v357_v10 = vmul.f32 %v562_v52, %v353_v7 }
 0x148   : > { %386 = vperm.xlu1 %554, %v364_v49  }
 0x149   : > { %v373_v12 = vsel %vm690_vm3, %v369_v11, %v357_v10 }
 0x14c   : > { %391 = vperm.xlu1 %554, %v365_v55  }
 0x150   : > { %404 = vperm.xlu1 %554, %v370_v59  }
 0x154   : > { %409 = vperm.xlu1 %554, %v371_v62  }
 0x158   : > { %414 = vperm.xlu1 %554, %v372_v21  }
 0x15c   : > { %419 = vperm.xlu1 %554, %v373_v12  }
 0x1bb   : > { %v377_v16 = vpop.permute.xlu0 %376 }
 0x1bc   : > { %v394_v18 = vmul.f32 %v377_v16, %v610_v0  ;;  %v395_v19 = vmul.f32 %v377_v16, %v612_v1 }
 0x1bf   : > { %v382_v15 = vpop.permute.xlu1 %381 }
 0x1c0   : > { %v396_v23 = vmul.f32 %v382_v15, %v620_v5  ;;  %v397_v24 = vmul.f32 %v382_v15, %v622_v6 }
 0x1c3   : > { %v387_v14 = vpop.permute.xlu1 %386 }
 0x1c4   : > { %v398_v0 = vmul.f32 %v387_v14, %v614_v2  ;;  %v399_v1 = vmul.f32 %v387_v14, %v618_v4 }
 0x1c7   : > { %v392_v17 = vpop.permute.xlu1 %391 }
 0x1c8   : > { %v400_v32 = vmul.f32 %v392_v17, %v626_v8  ;;  %v401_v5 = vmul.f32 %v392_v17, %v628_v9 }
 0x1cb   : > { %v405_v25 = vpop.permute.xlu1 %404 }
 0x1cc   : > { %v422_v20 = vadd.f32 %v405_v25, %v394_v18  ;;  %v423_v22 = vadd.f32 %v405_v25, %v395_v19 }
 0x1ce   : > { %430 = vst [vmem:[%s221_s29] sm:$0xff] %v422_v20  ;;  %431 = vst [vmem:[%s221_s29 + $0x8] sm:$0xff] %v423_v22 }
 0x1cf   : > { %v410_v26 = vpop.permute.xlu1 %409 }
 0x1d0   : > { %v424_v27 = vadd.f32 %v410_v26, %v396_v23  ;;  %v425_v28 = vadd.f32 %v410_v26, %v397_v24 }
 0x1d2   : > { %432 = vst [vmem:[%s221_s29 + $0x10] sm:$0xff] %v424_v27  ;;  %433 = vst [vmem:[%s221_s29 + $0x18] sm:$0xff] %v425_v28 }
 0x1d3   : > { %v415_v29 = vpop.permute.xlu1 %414 }
 0x1d4   : > { %v426_v30 = vadd.f32 %v415_v29, %v398_v0  ;;  %v427_v31 = vadd.f32 %v415_v29, %v399_v1 }
 0x1d6   : > { %434 = vst [vmem:[%s221_s29 + $0x20] sm:$0xff] %v426_v30  ;;  %435 = vst [vmem:[%s221_s29 + $0x28] sm:$0xff] %v427_v31 }
 0x1d7   : > { %v420_v6 = vpop.permute.xlu1 %419 }
 0x1d8   : > { %v428_v33 = vadd.f32 %v420_v6, %v400_v32  ;;  %v429_v34 = vadd.f32 %v420_v6, %v401_v5 }
 0x1da   : > { %436 = vst [vmem:[%s221_s29 + $0x30] sm:$0xff] %v428_v33  ;;  %437 = vst [vmem:[%s221_s29 + $0x38] sm:$0xff] %v429_v34 }
 0x1db PF: > { %s13_s12 = sadd.s32 1, %s569_s12  }
 0x1dc   : > { %p10_p4 = scmp.ge.s32.totalorder %s13_s12, 4  }
 0x1de   :  { %12 = sbr.rel (!%p10_p4) target bundleno = 1 (0x1), region = 68 }

</bundles_post_ra>
